<compile_context>
chip_gen: v7x
topology: tpu7x:2x2x1
jax: 0.10.0
libtpu: 0.0.40
codegen_flags: <defaults>
</compile_context>

<pallas_src>
import functools
import math

import jax
import jax.numpy as jnp
from jax.experimental import pallas as pl
from jax.experimental.pallas import tpu as pltpu


def _mlp_kernel(x_ref, w1t_ref, b1_ref, w2t_ref, b2_ref, o_ref, *, precision):
    # x_ref  : (1, Cin, TL)   channel-major spatial tile (lanes = spatial)
    # w1t_ref: (Hid, Cin)     conv1 weight, transposed (VMEM-resident)
    # b1_ref : (Hid, 1)       float32 (pre-cast on host)
    # w2t_ref: (Cout, Hid)    conv2 weight, transposed (VMEM-resident)
    # b2_ref : (Cout, 1)      float32 (pre-cast on host)
    # o_ref  : (1, Cout, TL)
    x = x_ref[0]                                              # (Cin, TL), native dtype
    h = jnp.dot(w1t_ref[...], x,
                preferred_element_type=jnp.float32, precision=precision)
    h = jnp.maximum(h + b1_ref[...], 0.0)                     # ReLU (biases already f32)

    w2t = w2t_ref[...]
    if w2t.dtype != jnp.float32:
        # bf16 path: feed bf16 operands straight to the MXU, accumulate in f32.
        h = h.astype(w2t.dtype)
    y = jnp.dot(w2t, h,
                preferred_element_type=jnp.float32, precision=precision)
    y = y + b2_ref[...]
    o_ref[0] = y.astype(o_ref.dtype)


def _vmem_budget_bytes():
    """75% of this generation's physical VMEM (48 MiB on v7x, 96 MiB on v5e/v6e)."""
    cap = 128 * 1024 * 1024
    try:
        info = pltpu.get_tpu_info()
        cap = int(getattr(info, "vmem_capacity_bytes", cap))
    except Exception:
        pass
    return (cap * 3) // 4


def _choose_spatial_tile(HW, N, Cin, Hid, Cout, x_itm, w_itm, vmem_budget,
                         user_cap=None, target_step_bytes=2 << 20):
    """Pick the spatial (lane) tile length TL.

    Sized so that (a) per-step x+out HBM traffic is ~target_step_bytes, and
    (b) double-buffered I/O tiles + f32 hidden + weight copies fit the VMEM budget.
    Returns a multiple of 128 (lane-dense stores) unless HW itself fits one tile.
    """
    # Per-lane VMEM bytes: double-buffered x/out tiles, f32 hidden, optional bf16
    # cast of hidden (bf16 weight path), f32 output before the final down-cast.
    per_lane = (2 * (Cin + Cout) * x_itm
                + Hid * 4
                + (Hid * w_itm if w_itm != 4 else 0)
                + Cout * 4)
    w_bytes = (Hid * Cin + Cout * Hid) * w_itm + (Hid + Cout) * 4
    avail = max(vmem_budget - 2 * w_bytes - (2 << 20), per_lane * 128)
    tl_vmem = avail // per_lane
    tl_traffic = max(128, target_step_bytes // max(1, (Cin + Cout) * x_itm))

    cap = min(tl_vmem, tl_traffic, 16384)
    if user_cap is not None:
        cap = min(cap, int(user_cap))
    cap = max(128, (int(cap) // 128) * 128)

    if HW <= cap:
        tl = HW                       # one full-extent tile per image (always legal)
    else:
        # Prefer a 128-multiple tile that divides HW (no ragged edge); otherwise
        # keep `cap` and let Pallas mask the ragged last tile.
        tl = cap
        t = cap
        while t >= 128:
            if HW % t == 0:
                tl = t
                break
            t -= 128

    # Megacore balance (v7x has 2 TensorCores): ensure >= 2 parallel grid steps.
    steps = N * (-(-HW // tl))
    if steps < 2 and HW >= 256:
        tl = ((-(-HW // 2) + 127) // 128) * 128
    return tl


def mlp_pallas(x_nchw, w1, b1, w2, b2, *, spatial_tile=None):
    """x_nchw: (N, Cin, H, W); w1: (Cin, Hid); w2: (Hid, Cout). Returns (N, Cout, H, W)."""
    N, Cin, H, W = x_nchw.shape
    Hid = w1.shape[1]
    Cout = w2.shape[1]
    HW = H * W

    # Channel-major view: (N, Cin, H*W) -- no transpose, spatial axis on lanes.
    x3 = x_nchw.reshape(N, Cin, HW)

    x_itm = jnp.dtype(x_nchw.dtype).itemsize
    w_itm = jnp.dtype(w1.dtype).itemsize

    vmem_budget = _vmem_budget_bytes()
    tl = _choose_spatial_tile(HW, N, Cin, Hid, Cout, x_itm, w_itm, vmem_budget,
                              user_cap=spatial_tile)
    grid = (N, -(-HW // tl))          # cdiv: ragged last tile is padded/masked

    # Tiny one-time weight transposes; biases pre-cast to f32 (hoisted out of kernel).
    w1t = jnp.transpose(w1)                        # (Hid, Cin)
    w2t = jnp.transpose(w2)                        # (Cout, Hid)
    b1c = b1.astype(jnp.float32).reshape(Hid, 1)
    b2c = b2.astype(jnp.float32).reshape(Cout, 1)

    # f32 path: HIGHEST precision so the MXU result matches an f32 reference.
    precision = (jax.lax.Precision.HIGHEST
                 if (x_nchw.dtype == jnp.float32 and w1.dtype == jnp.float32)
                 else None)
    kernel = functools.partial(_mlp_kernel, precision=precision)

    bytes_x = N * Cin * HW * x_itm
    bytes_o = N * Cout * HW * x_itm
    bytes_w = (w1t.size + w2t.size) * w_itm + (b1c.size + b2c.size) * 4
    cost = pl.CostEstimate(
        flops=2 * N * HW * (Cin * Hid + Hid * Cout),
        transcendentals=0,
        bytes_accessed=bytes_x + bytes_o + bytes_w,
    )

    out = pl.pallas_call(
        kernel,
        out_shape=jax.ShapeDtypeStruct((N, Cout, HW), x_nchw.dtype),
        grid_spec=pltpu.PrefetchScalarGridSpec(
            num_scalar_prefetch=0,
            grid=grid,
            in_specs=[
                pl.BlockSpec((1, Cin, tl), lambda n, j: (n, 0, j)),   # x tile
                pl.BlockSpec((Hid, Cin), lambda n, j: (0, 0)),        # W1^T (resident)
                pl.BlockSpec((Hid, 1), lambda n, j: (0, 0)),          # b1 (f32)
                pl.BlockSpec((Cout, Hid), lambda n, j: (0, 0)),       # W2^T (resident)
                pl.BlockSpec((Cout, 1), lambda n, j: (0, 0)),         # b2 (f32)
            ],
            out_specs=pl.BlockSpec((1, Cout, tl), lambda n, j: (n, 0, j)),
        ),
        compiler_params=pltpu.CompilerParams(
            dimension_semantics=("parallel", "parallel"),
            vmem_limit_bytes=int(vmem_budget),
        ),
        cost_estimate=cost,
    )(x3, w1t, b1c, w2t, b2c)

    return out.reshape(N, Cout, H, W)


def init_mlp_params(key, network_depth, in_features, hidden_features, out_features,
                    dtype=jnp.float32):
    """Deterministic re-implementation of Mlp._init_weights.

    Conv2d 1x1 weights have shape (out_ch, in_ch, 1, 1); fan_in = in_ch,
    fan_out = out_ch.  std = gain * sqrt(2 / (fan_in + fan_out)),
    gain = (8 * network_depth) ** (-1/4).  trunc_normal_ truncates at +/- 2 std.
    Biases are zero.  Weights stored as (in_ch, out_ch) matmul matrices.
    """
    gain = (8 * network_depth) ** (-1.0 / 4.0)
    k1, k2 = jax.random.split(key)

    def trunc(k, fan_in, fan_out):
        std = gain * math.sqrt(2.0 / float(fan_in + fan_out))
        w = jax.random.truncated_normal(k, -2.0, 2.0, (fan_in, fan_out)) * std
        return w.astype(dtype)

    w1 = trunc(k1, in_features, hidden_features)       # (Cin, Hid)
    b1 = jnp.zeros((hidden_features,), dtype)
    w2 = trunc(k2, hidden_features, out_features)      # (Hid, Cout)
    b2 = jnp.zeros((out_features,), dtype)
    return w1, b1, w2, b2


if __name__ == "__main__":
    key = jax.random.PRNGKey(0)
    kx, kp, kx2 = jax.random.split(key, 3)

    # Small shapes consistent with the module's forward: NCHW input.
    N, Cin, H, W = 2, 4, 16, 16
    hidden = 32
    out_ch = Cin                      # out_features defaults to in_features
    network_depth = 4

    x = jax.random.normal(kx, (N, Cin, H, W), jnp.float32)
    w1, b1, w2, b2 = init_mlp_params(kp, network_depth, Cin, hidden, out_ch)

    def ref_mlp(xin):
        n, c, h, w = xin.shape
        x_tok = jnp.transpose(xin, (0, 2, 3, 1)).reshape(-1, c)
        h_ref = jnp.maximum(
            jnp.dot(x_tok, w1, precision=jax.lax.Precision.HIGHEST) + b1, 0.0)
        r = jnp.dot(h_ref, w2, precision=jax.lax.Precision.HIGHEST) + b2
        return r.reshape(n, h, w, out_ch).transpose(0, 3, 1, 2)

    # Main case: spatial extent divisible by 128, auto tile (full 256-lane tile).
    y = jax.block_until_ready(mlp_pallas(x, w1, b1, w2, b2))
    assert y.shape == (N, out_ch, H, W)
    assert jnp.allclose(y, ref_mlp(x), atol=1e-4, rtol=1e-4)

    # Ragged / N==1 case: HW=400 with a forced 128-lane tile exercises the cdiv
    # grid with a masked last tile and the megacore (>=2 steps) balance path.
    x2 = jax.random.normal(kx2, (1, Cin, 20, 20), jnp.float32)
    y2 = jax.block_until_ready(mlp_pallas(x2, w1, b1, w2, b2, spatial_tile=128))
    assert y2.shape == (1, out_ch, 20, 20)
    assert jnp.allclose(y2, ref_mlp(x2), atol=1e-4, rtol=1e-4)

    print("KERNEL_OK")
</pallas_src>

<mosaic_0001>
module attributes {stable_mosaic.version = 11 : i64} {
  func.func @_mlp_kernel(%arg0: i32, %arg1: i32, %arg2: memref<1x4x256xf32, #tpu.memory_space<vmem>>, %arg3: memref<32x4xf32, #tpu.memory_space<vmem>>, %arg4: memref<32x1xf32, #tpu.memory_space<vmem>>, %arg5: memref<4x32xf32, #tpu.memory_space<vmem>>, %arg6: memref<4x1xf32, #tpu.memory_space<vmem>>, %arg7: memref<1x4x256xf32, #tpu.memory_space<vmem>>) attributes {dimension_semantics = [#tpu.dimension_semantics<parallel>, #tpu.dimension_semantics<parallel>], iteration_bounds = array<i64: 2, 1>, scalar_prefetch = 0 : i64, scratch_operands = 0 : i64, tpu.core_type = #tpu.core_type<tc>, window_params = [{transform_indices = @transform_0, window_bounds = array<i64: 1, 4, 256>}, {pipeline_mode = #tpu.pipeline_mode<synchronous>, transform_indices = @transform_1, window_bounds = array<i64: 32, 4>}, {pipeline_mode = #tpu.pipeline_mode<synchronous>, transform_indices = @transform_2, window_bounds = array<i64: 32, 1>}, {pipeline_mode = #tpu.pipeline_mode<synchronous>, transform_indices = @transform_3, window_bounds = array<i64: 4, 32>}, {pipeline_mode = #tpu.pipeline_mode<synchronous>, transform_indices = @transform_4, window_bounds = array<i64: 4, 1>}, {transform_indices = @transform_5, window_bounds = array<i64: 1, 4, 256>}]} {
    %c0 = arith.constant 0 : index
    %c0_0 = arith.constant 0 : index
    %c0_1 = arith.constant 0 : index
    %0 = vector.load %arg2[%c0, %c0_0, %c0_1] : memref<1x4x256xf32, #tpu.memory_space<vmem>>, vector<1x4x256xf32>
    %1 = vector.shape_cast %0 : vector<1x4x256xf32> to vector<4x256xf32>
    %c0_2 = arith.constant 0 : index
    %c0_3 = arith.constant 0 : index
    %2 = vector.load %arg3[%c0_2, %c0_3] : memref<32x4xf32, #tpu.memory_space<vmem>>, vector<32x4xf32>
    %cst = arith.constant dense<0.000000e+00> : vector<32x256xf32>
    %3 = tpu.matmul %2, %1, %cst {dimension_numbers = #tpu.dot_dimension_numbers<[1], [0], [0], [1], [0, 0, 1, 1], [], []>, precision = #tpu.contract_precision<fp32>} : vector<32x4xf32>, vector<4x256xf32>, vector<32x256xf32> -> vector<32x256xf32>
    %c0_4 = arith.constant 0 : index
    %c0_5 = arith.constant 0 : index
    %4 = vector.load %arg4[%c0_4, %c0_5] : memref<32x1xf32, #tpu.memory_space<vmem>>, vector<32x1xf32>
    %5 = vector.broadcast %4 : vector<32x1xf32> to vector<32x256xf32>
    %6 = arith.addf %3, %5 : vector<32x256xf32>
    %cst_6 = arith.constant 0.000000e+00 : f32
    %7 = vector.broadcast %cst_6 : f32 to vector<32x256xf32>
    %8 = arith.maximumf %6, %7 : vector<32x256xf32>
    %c0_7 = arith.constant 0 : index
    %c0_8 = arith.constant 0 : index
    %9 = vector.load %arg5[%c0_7, %c0_8] : memref<4x32xf32, #tpu.memory_space<vmem>>, vector<4x32xf32>
    %cst_9 = arith.constant dense<0.000000e+00> : vector<4x256xf32>
    %10 = tpu.matmul %9, %8, %cst_9 {dimension_numbers = #tpu.dot_dimension_numbers<[1], [0], [0], [1], [0, 0, 1, 1], [], []>, precision = #tpu.contract_precision<fp32>} : vector<4x32xf32>, vector<32x256xf32>, vector<4x256xf32> -> vector<4x256xf32>
    %c0_10 = arith.constant 0 : index
    %c0_11 = arith.constant 0 : index
    %11 = vector.load %arg6[%c0_10, %c0_11] : memref<4x1xf32, #tpu.memory_space<vmem>>, vector<4x1xf32>
    %12 = vector.broadcast %11 : vector<4x1xf32> to vector<4x256xf32>
    %13 = arith.addf %10, %12 : vector<4x256xf32>
    %c0_12 = arith.constant 0 : index
    %c0_13 = arith.constant 0 : index
    %c0_14 = arith.constant 0 : index
    %14 = vector.load %arg7[%c0_12, %c0_13, %c0_14] : memref<1x4x256xf32, #tpu.memory_space<vmem>>, vector<1x4x256xf32>
    %15 = vector.shape_cast %14 : vector<1x4x256xf32> to vector<4x256xf32>
    %16 = vector.shape_cast %13 : vector<4x256xf32> to vector<1x4x256xf32>
    tpu.vector_store %arg7[%c0_12, %c0_13, %c0_14], %16 {strides = array<i32>} : memref<1x4x256xf32, #tpu.memory_space<vmem>>, vector<1x4x256xf32>,
    return
  }
  func.func @transform_0(%arg0: i32, %arg1: i32) -> (i32, i32, i32) {
    %c0_i32 = arith.constant 0 : i32
    %c0_i32_0 = arith.constant 0 : i32
    return %arg0, %c0_i32, %arg1 : i32, i32, i32
  }
  func.func @transform_1(%arg0: i32, %arg1: i32) -> (i32, i32) {
    %c0_i32 = arith.constant 0 : i32
    %c0_i32_0 = arith.constant 0 : i32
    %c0_i32_1 = arith.constant 0 : i32
    return %c0_i32, %c0_i32_0 : i32, i32
  }
  func.func @transform_2(%arg0: i32, %arg1: i32) -> (i32, i32) {
    %c0_i32 = arith.constant 0 : i32
    %c0_i32_0 = arith.constant 0 : i32
    %c0_i32_1 = arith.constant 0 : i32
    return %c0_i32, %c0_i32_0 : i32, i32
  }
  func.func @transform_3(%arg0: i32, %arg1: i32) -> (i32, i32) {
    %c0_i32 = arith.constant 0 : i32
    %c0_i32_0 = arith.constant 0 : i32
    %c0_i32_1 = arith.constant 0 : i32
    return %c0_i32, %c0_i32_0 : i32, i32
  }
  func.func @transform_4(%arg0: i32, %arg1: i32) -> (i32, i32) {
    %c0_i32 = arith.constant 0 : i32
    %c0_i32_0 = arith.constant 0 : i32
    %c0_i32_1 = arith.constant 0 : i32
    return %c0_i32, %c0_i32_0 : i32, i32
  }
  func.func @transform_5(%arg0: i32, %arg1: i32) -> (i32, i32, i32) {
    %c0_i32 = arith.constant 0 : i32
    %c0_i32_0 = arith.constant 0 : i32
    return %arg0, %c0_i32, %arg1 : i32, i32, i32
  }
}

</mosaic_0001>

<bundles_post_ra>
// kernel: tpu_custom_call.1
= control target key start
LH: loop header
LB: loop body
LE: loop exit
PB: predicated region body
PF: predicated region fallthrough
CT: control target
= control target key end

     0   :  { %10 = vsyncpa [#allocation3], 0  ;;  %s2641_s0 = inlined_call_operand.hbm [shape: f32[2,4,256], index: 0, kind: input, shape index: {}]   ;;  %s2642_s1 = inlined_call_operand.hbm [shape: f32[32,4], index: 1, kind: input, shape index: {}]   ;;  %s2643_s2 = inlined_call_operand.hbm [shape: f32[32,1], index: 2, kind: input, shape index: {}]   ;;  %s2644_s3 = inlined_call_operand.hbm [shape: f32[4,32], index: 3, kind: input, shape index: {}]   ;;  %s2645_s4 = inlined_call_operand.hbm [shape: f32[4,1], index: 4, kind: input, shape index: {}]   ;;  %s2646_s5 = inlined_call_operand.hbm [shape: f32[2,4,256], index: 5, kind: output, shape index: {}]  }
   0x1   :  { %12 = vsyncpa [#allocation3 + $0x1], 0 }
   0x2   :  { %13 = vsyncpa [#allocation6], 0 }
   0x3   :  { %14 = vsyncpa [#allocation9], 0 }
   0x4   :  { %15 = vsyncpa [#allocation4], 0 }
   0x5   :  { %17 = vsyncpa [#allocation4 + $0x1], 0  ;;  %s2201_s18 = smov 0   ;;  %s2203_s19 = smov 0  }
   0x6   :  { %s2205_s20 = smov 0   ;;  %s2207_s21 = smov 0  }
   0x7   :  { %s2209_s22 = smov 0   ;;  %s2211_s23 = smov 0  }
   0x8 LB: > { %s1682_s24 = sadd.s32 4294967295, %s2159_s23   ;;  %p1684_p0 = scmp.ge.s32.totalorder %s2159_s23, 1  ;;  %s2159_s23 = sphi %s2211_s23, %s23_s23   ;;  %s2155_s22 = sphi %s2209_s22, %s2670_s22   ;;  %s2151_s21 = sphi %s2207_s21, %s2669_s21   ;;  %s2147_s20 = sphi %s2205_s20, %s2668_s20   ;;  %s2143_s19 = sphi %s2203_s19, %s2667_s19   ;;  %s2139_s18 = sphi %s2201_s18, %s2666_s18  }
   0x9   : > { %p2235_p1 = scmp.eq.s32.totalorder %s1682_s24, 0  ;;  %p180_p2 = scmp.lt.s32.totalorder %s2159_s23, 3 }
   0xa   : > { %s2161_s27 = smov [#allocation5]   ;;  %s2162_s30 = smov [#allocation8]  }
   0xb   : > { %s2651_s25 = scalar_select %p2235_p1, 1, 0 }
   0xc   : > { %p2240_p3 = pnand %p1684_p0, %p180_p2  ;;  %s192_s28 = sshll.u32 %s2161_s27, 4  ;;  %s2244_s28 = int_to_ptr.vmem [resolvable:$true] %s192_s28 }
   0xd   : > { %s219_s6 = sshll.u32 %s2162_s30, 4  ;;  %s2163_s7 = smov [#allocation7]   ;;  %s2255_s6 = int_to_ptr.vmem [resolvable:$true] %s219_s6 }
   0xe   : > { %s2652_s26 = scalar_select %p2240_p3, 1, 0 }
   0xf   : > { %p1837_p4 = pneg %p2240_p3  ;;  %s2257_s8 = sshll.u32 %s2163_s7, 4  ;;  %s206_s8 = int_to_ptr.vmem [resolvable:$true] %s2257_s8 }
  0x10   : > { %s1927_s11 = scalar_lea.hbm %s2642_s1, 512 }
  0x11   : > { %p2251_p6 = pnand %p1837_p4, %p2235_p1  ;;  %p1928_p7 = scmp.ne.s32.totalorder %s2642_s1, %s1927_s11 }
  0x12   : > { %p1934_p11 = scmp.lt.u32.totalorder %s1927_s11, %s2642_s1 }
  0x13   : > { %p2267_p8 = pneg %p2251_p6 }
  0x15   : > { %p1930_p9 = pnand %p2267_p8, %p1928_p7 }
  0x17   : > { %p1931_p10 = pneg %p1930_p9 }
  0x19   : > { %p1936_p12 = pnand %p1934_p11, %p1931_p10 }
  0x1b   : > { %1939 = shalt.err (!%p1936_p12)
}
  0x1c   : > { %s1940_s17 = scalar_lea.vmem %s2244_s28, 512  ;;  %p1948_p4 = scmp.lt.s32.totalorder %s2244_s28, %s2244_s28 }
  0x1d   : > { %p1941_p13 = scmp.ne.s32.totalorder %s2244_s28, %s1940_s17  ;;  %p1949_p5 = scmp.lt.s32.totalorder %s1940_s17, %s1940_s17 }
  0x1f   : > { %p1943_p0 = pnand %p1941_p13, %p2267_p8  ;;  %p1950_p7 = por %p1949_p5, %p1948_p4 }
  0x21   : > { %p1944_p2 = pneg %p1943_p0 }
  0x23   : > { %p1951_p9 = pnand %p1950_p7, %p1944_p2 }
  0x25   : > { %1954 = shalt.err (!%p1951_p9)
}
  0x26   : > { %s2164_s27 = smov 128   ;;  %s2165_s30 = smov 8  }
  0x27   : > { %1840 = dma.hbm_to_vmem [thread:$0]  (!%p2251_p6), %s2642_s1, 512, %s2244_s28, [#allocation6], %s2164_s27, %s2164_s27, %s2165_s30  }
  0x28   : > { %s1955_s12 = scalar_lea.hbm %s2644_s3, 64 }
  0x29   : > { %p1956_p5 = scmp.ne.s32.totalorder %s2644_s3, %s1955_s12  ;;  %p1962_p12 = scmp.lt.u32.totalorder %s1955_s12, %s2644_s3 }
  0x2b   : > { %p1958_p10 = pnand %p1956_p5, %p2267_p8 }
  0x2d   : > { %p1959_p11 = pneg %p1958_p10 }
  0x2f   : > { %p1964_p13 = pnand %p1962_p12, %p1959_p11 }
  0x31   : > { %1967 = shalt.err (!%p1964_p13)
}
  0x32   : > { %s1968_s28 = scalar_lea.vmem %s2255_s6, 64  ;;  %p1976_p7 = scmp.lt.s32.totalorder %s2255_s6, %s2255_s6 }
  0x33   : > { %p1969_p0 = scmp.ne.s32.totalorder %s2255_s6, %s1968_s28  ;;  %p1977_p9 = scmp.lt.s32.totalorder %s1968_s28, %s1968_s28 }
  0x35   : > { %p1971_p2 = pnand %p1969_p0, %p2267_p8  ;;  %p1978_p5 = por %p1977_p9, %p1976_p7 }
  0x37   : > { %p1972_p4 = pneg %p1971_p2 }
  0x39   : > { %p1979_p10 = pnand %p1978_p5, %p1972_p4 }
  0x3b   : > { %1982 = shalt.err (!%p1979_p10)
}
  0x3c   : > { %1846 = dma.hbm_to_vmem [thread:$0]  (!%p2251_p6), %s2644_s3, 64, %s2255_s6, [#allocation9]  }
  0x3d   : > { %s1983_s12 = scalar_lea.hbm %s2643_s2, 512 }
  0x3e   : > { %p1984_p11 = scmp.ne.s32.totalorder %s2643_s2, %s1983_s12  ;;  %p1990_p0 = scmp.lt.u32.totalorder %s1983_s12, %s2643_s2 }
  0x40   : > { %p1986_p12 = pnand %p1984_p11, %p2267_p8 }
  0x42   : > { %p1987_p13 = pneg %p1986_p12 }
  0x44   : > { %p1992_p2 = pnand %p1990_p0, %p1987_p13 }
  0x46   : > { %1995 = shalt.err (!%p1992_p2)
}
  0x47   : > { %s1996_s28 = scalar_lea.vmem %s206_s8, 512  ;;  %p2004_p5 = scmp.lt.s32.totalorder %s206_s8, %s206_s8 }
  0x48   : > { %p1997_p4 = scmp.ne.s32.totalorder %s206_s8, %s1996_s28  ;;  %p2005_p10 = scmp.lt.s32.totalorder %s1996_s28, %s1996_s28 }
  0x4a   : > { %p1999_p7 = pnand %p1997_p4, %p2267_p8  ;;  %p2006_p3 = por %p2005_p10, %p2004_p5 }
  0x4c   : > { %p2000_p9 = pneg %p1999_p7 }
  0x4e   : > { %p2007_p1 = pnand %p2006_p3, %p2000_p9 }
  0x50   : > { %2010 = shalt.err (!%p2007_p1)
}
  0x51   : > { %1843 = dma.hbm_to_vmem [thread:$0]  (!%p2251_p6), %s2643_s2, 512, %s206_s8, [#allocation6], %s2164_s27, %s2164_s27, %s2165_s30  }
  0x52   : > { %s2166_s9 = smov [#allocation10]   ;;  %s2011_s13 = scalar_lea.hbm %s2645_s4, 64 }
  0x53   : > { %s230_s10 = sshll.u32 %s2166_s9, 4  ;;  %p2012_p1 = scmp.ne.s32.totalorder %s2645_s4, %s2011_s13  ;;  %s231_s10 = int_to_ptr.vmem [resolvable:$true] %s230_s10 }
  0x54   : > { %p2018_p12 = scmp.lt.u32.totalorder %s2011_s13, %s2645_s4 }
  0x55   : > { %p2014_p3 = pnand %p2012_p1, %p2267_p8 }
  0x57   : > { %p2015_p11 = pneg %p2014_p3 }
  0x59   : > { %p2020_p13 = pnand %p2018_p12, %p2015_p11 }
  0x5b   : > { %2023 = shalt.err (!%p2020_p13)
}
  0x5c   : > { %s2024_s8 = scalar_lea.vmem %s231_s10, 64  ;;  %p2032_p7 = scmp.lt.s32.totalorder %s231_s10, %s231_s10 }
  0x5d   : > { %p2025_p0 = scmp.ne.s32.totalorder %s231_s10, %s2024_s8  ;;  %p2033_p9 = scmp.lt.s32.totalorder %s2024_s8, %s2024_s8 }
  0x5f   : > { %p2027_p2 = pnand %p2025_p0, %p2267_p8  ;;  %p2034_p5 = por %p2033_p9, %p2032_p7 }
  0x61   : > { %p2028_p4 = pneg %p2027_p2 }
  0x63   : > { %p2035_p10 = pnand %p2034_p5, %p2028_p4 }
  0x65   : > { %2038 = shalt.err (!%p2035_p10)
}
  0x66   : > { %1849 = dma.hbm_to_vmem [thread:$0]  (!%p2251_p6), %s2645_s4, 64, %s231_s10, [#allocation9]  }
  0x67   : > { %s1683_s14 = sadd.s32 4294967294, %s2159_s23   ;;  %s35_s6 = sadd.s32 1, %s2155_s22 }
  0x68   : > { %p37_p8 = scmp.ge.s32.totalorder %s35_s6, 2  ;;  %s44_s29 = sadd.s32 1, %s2147_s20 }
  0x69   : > { %p51_p1 = scmp.ne.s32.totalorder %s2147_s20, %s2143_s19  ;;  %p52_p3 = scmp.eq.s32.totalorder %s2159_s23, 0 }
  0x6a   : > { %s2672_s6 = smov (%p37_p8, %s35_s6), 0  ;;  %p57_p12 = scmp.ne.s32.totalorder %s2143_s19, %s2139_s18 }
  0x6b   : > { %p2362_p11 = por %p52_p3, %p51_p1  ;;  %s39_s9 = ssub.s32 %s2155_s22, %s2672_s6 }
  0x6c   : > { %p167_p6 = scmp.eq.s32.totalorder %s1682_s24, 1  ;;  %p42_p13 = scmp.eq.s32.totalorder %s39_s9, 0 }
  0x6d   : > { %p2656_p0 = scmp.ne.s32.totalorder %s2651_s25, 0  ;;  %p173_p7 = scmp.eq.s32.totalorder %s1683_s14, 1 }
  0x6e   : > { %p2378_p4 = por %p167_p6, %p51_p1  ;;  %p1862_p5 = scmp.lt.s32.totalorder %s2159_s23, 2 }
  0x6f   : > { %p2374_p2 = por %p2656_p0, %p57_p12  ;;  %p2385_p9 = por %p173_p7, %p57_p12 }
  0x70   : > { %s2658_s11 = scalar_select %p2378_p4, 1, 0 }
  0x71   : > { %s2383_s12 = scalar_select %p42_p13, %s2147_s20, %s44_s29  }
  0x72   : > { %s2659_s13 = scalar_select %p2385_p9, 1, 0 }
  0x73   : > { %s241_s15 = sand.u32 1, %s2147_s20   ;;  %s1705_s24 = sshll.u32 %s2155_s22, 7 }
  0x74   : > { %s1690_s16 = sshll.u32 %s241_s15, 3  ;;  %s2395_s8 = scalar_lea.hbm %s2641_s0, %s1705_s24 }
  0x75   : > { %s245_s27 = scalar_lea.vmem [#allocation2], %s1690_s16  ;;  %p2399_p10 = pnand %p1862_p5, %p2362_p11 }
  0x76   : > { %s255_s30 = sshll.u32 %s245_s27, 4  ;;  %s242_s29 = scalar_lea.sflag [#allocation3], %s241_s15  ;;  %s2403_s30 = int_to_ptr.vmem [resolvable:$true] %s255_s30 }
  0x77   : > { %s2039_s9 = scalar_lea.hbm %s2395_s8, 128  ;;  %p2041_p1 = pneg %p2399_p10 }
  0x78   : > { %p2040_p8 = scmp.ne.s32.totalorder %s2395_s8, %s2039_s9  ;;  %s2044_s7 = scalar_lea.hbm %s2641_s0, 256 }
  0x79   : > { %p2045_p11 = scmp.lt.u32.totalorder %s2395_s8, %s2641_s0  ;;  %p2046_p6 = scmp.lt.u32.totalorder %s2044_s7, %s2039_s9 }
  0x7a   : > { %p2042_p3 = pnand %p2041_p1, %p2040_p8  ;;  %p2048_p0 = scmp.lt.u32.totalorder %s2039_s9, %s2395_s8 }
  0x7b   : > { %p2047_p13 = por %p2046_p6, %p2045_p11 }
  0x7c   : > { %p2043_p12 = pneg %p2042_p3 }
  0x7d   : > { %p2049_p7 = por %p2048_p0, %p2047_p13 }
  0x7f   : > { %p2050_p5 = pnand %p2049_p7, %p2043_p12 }
  0x81   : > { %2053 = shalt.err (!%p2050_p5)
}
  0x82   : > { %s2054_s15 = scalar_lea.vmem %s2403_s30, 128  ;;  %s2167_s27 = smov [#allocation2]  }
  0x83   : > { %p2055_p8 = scmp.ne.s32.totalorder %s2403_s30, %s2054_s15  ;;  %s2059_s24 = sshll.u32 %s2167_s27, 4  ;;  %s2060_s24 = int_to_ptr.vmem [resolvable:$false] %s2059_s24 }
  0x84   : > { %s2061_s16 = scalar_lea.vmem %s2060_s24, 256  ;;  %p2062_p4 = scmp.lt.s32.totalorder %s2403_s30, %s2060_s24 }
  0x85   : > { %p2057_p3 = pnand %p2055_p8, %p2041_p1  ;;  %p2063_p11 = scmp.lt.s32.totalorder %s2061_s16, %s2054_s15 }
  0x87   : > { %p2058_p9 = pneg %p2057_p3  ;;  %p2064_p6 = por %p2063_p11, %p2062_p4 }
  0x89   : > { %p2065_p13 = pnand %p2064_p6, %p2058_p9 }
  0x8b   : > { %2068 = shalt.err (!%p2065_p13)
}
  0x8c   : > { %1853 = dma.hbm_to_vmem [thread:$0]  (!%p2399_p10), %s2395_s8, 128, %s2403_s30, %s242_s29  }
  0x8d   : > { %p2661_p12 = scmp.ne.s32.totalorder %s2652_s26, 0 }
  0x8e   : > { %s2433_s9 = sand.u32 (!%p2661_p12), 1, %s2143_s19  }
  0x8f   : > { %264 = sbr.rel (%p2661_p12) target bundleno = 737 (0x2e1), region = 40  ;;  %s1694_s7 = sshll.u32 (!%p2661_p12), %s2433_s9, 3 }
  0x90   : > { %s267_s17 = scalar_lea.sflag (!%p2661_p12), [#allocation3], %s2433_s9  ;;  %s270_s28 = scalar_lea.vmem (!%p2661_p12), [#allocation2], %s1694_s7 }
  0x96   : > { %2122 = dma.done.wait (%p2374_p2), %s267_s17, 128  }
  0x97   : > { %2124 = vsyncadd (%p2374_p2), %s267_s17, 4294967168  ;;  %p2662_p4 = scmp.ne.s32.totalorder %s2651_s25, 0 }
  0x99   : > { %2126 = dma.done.wait (%p2662_p4), [#allocation6], 1024  }
  0x9a   : > { %2128 = vsyncadd (%p2662_p4), [#allocation6], 4294966272 }
  0x9b   : > { %2130 = dma.done.wait (%p2662_p4), [#allocation9], 128  }
  0x9c   : > { %2132 = vsyncadd (%p2662_p4), [#allocation9], 4294967168  ;;  %v2168_v0 = vmov 0.0   ;;  %v2169_v1 = vmov 0   ;;  %vm359_vm0 = vcmask 1043456   ;;  %vm346_vm1 = vcmask 31744  }
  0x9d   : > { %549 = vmatprep.mubr.f32.mxu0 %v2168_v0  ;;  %430 = vmatprep.mubr.f32.mxu1 %v2168_v0  ;;  %v315_v2 = vld [vmem:[%s270_s28] sm:$0xff]  ;;  %v316_v3 = vld [vmem:[#allocation5] sm:$0xff]  ;;  %v317_v4 = vld [vmem:[#allocation5 + $0x8] sm:$0xff]  ;;  %vm991_vm2 = vcmask 261120   ;;  %s1706_s25 = sshll.u32 %s2151_s21, 7  ;;  %s312_s26 = scalar_lea.vmem [#allocation11], %s1694_s7 }
  0x9e   : > { %1924 = vset.pattern.permute.xlu0 %v2169_v1  ;;  %1925 = vset.pattern.permute.xlu1 %v2169_v1  ;;  %v345_v5 = vcombine.high %v315_v2, %v315_v2  ;;  %v360_v6 = vsel %vm359_vm0, %v315_v2, 0  ;;  %v348_v7 = vsel %vm346_vm1, %v316_v3, 0  ;;  %v351_v8 = vsel %vm346_vm1, %v317_v4, 0  ;;  %v318_v9 = vld [vmem:[#allocation5 + $0x10] sm:$0xff]  ;;  %v320_v10 = vld [vmem:[#allocation7] sm:$0xff]  ;;  %v319_v15 = vld [vmem:[#allocation5 + $0x18] sm:$0xff]  ;;  %s2592_s14 = scalar_lea.hbm %s2646_s5, %s1706_s25 }
  0x9f   : > { %v2456_v11 = vand.u32 4294901760, %v360_v6  ;;  %v2458_v12 = vand.u32 4294901760, %v348_v7  ;;  %v2460_v13 = vand.u32 4294901760, %v351_v8  ;;  %v354_v14 = vsel %vm346_vm1, %v318_v9, 0  ;;  %326 = vperm.xlu0 %1924, %v320_v10   ;;  %v322_v16 = vld [vmem:[#allocation7 + $0x10] sm:$0xff]  ;;  %v321_v19 = vld [vmem:[#allocation7 + $0x8] sm:$0xff] }
  0xa0   : > { %v362_v17 = vsel %vm359_vm0, %v345_v5, 0  ;;  %v2464_v18 = vand.u32 4294901760, %v354_v14  ;;  %336 = vperm.xlu1 %1925, %v322_v16   ;;  %v323_v24 = vld [vmem:[#allocation7 + $0x18] sm:$0xff]  ;;  %v357_v25 = vsel %vm346_vm1, %v319_v15, 0  ;;  %v985_v31 = vld [vmem:[#allocation10] sm:$0xf] }
  0xa1   : > { %v2466_v20 = vand.u32 4294901760, %v362_v17  ;;  %v2469_v21 = vsub.f32 %v360_v6, %v2456_v11  ;;  %v2472_v22 = vsub.f32 %v348_v7, %v2458_v12  ;;  %v2475_v23 = vsub.f32 %v351_v8, %v2460_v13  ;;  %v984_v57 = vld [vmem:[#allocation8] sm:$0xf]  ;;  %s1560_s10 = sshll.u32 %s312_s26, 4  ;;  %s1544_s29 = scalar_lea.sflag [#allocation4], %s2433_s9  ;;  %s2594_s10 = int_to_ptr.vmem [resolvable:$true] %s1560_s10 }
  0xa2   : > { %v454_v30 = vsub.f32 %v354_v14, %v2464_v18  ;;  %v2486_v34 = vand.u32 4294901760, %v357_v25  ;;  %v993_v58 = vsel %vm991_vm2, %v984_v57, 0  ;;  %s2069_s15 = scalar_lea.vmem %s2594_s10, 128  ;;  %p2663_p9 = scmp.ne.s32.totalorder %s2658_s11, 0 }
  0xa3   : > { %v476_v26 = vsub.f32 %v362_v17, %v2466_v20  ;;  %v483_v27 = vand.u32 4294901760, %v2469_v21  ;;  %v433_v28 = vand.u32 4294901760, %v2472_v22  ;;  %365 = vmatprep.subr.mxu1 %v2466_v20  ;;  %v444_v29 = vand.u32 4294901760, %v2475_v23  ;;  %331 = vperm.xlu0 %1924, %v321_v19   ;;  %p2070_p2 = scmp.ne.s32.totalorder %s2594_s10, %s2069_s15  ;;  %s2170_s21 = smov [#allocation11]  }
  0xa4   : > { %367 = vmatpush1.msra.mxu1 %v2456_v11  ;;  %341 = vperm.xlu1 %1925, %v323_v24   ;;  %v455_v38 = vand.u32 4294901760, %v454_v30  ;;  %v465_v42 = vsub.f32 %v357_v25, %v2486_v34  ;;  %v2533_v60 = vand.u32 4294901760, %v993_v58  ;;  %s2073_s27 = sshll.u32 %s2170_s21, 4  ;;  %s2074_s27 = int_to_ptr.vmem [resolvable:$false] %s2073_s27 }
  0xa5   : > { %v477_v32 = vand.u32 4294901760, %v476_v26  ;;  %v484_v33 = vsub.f32 %v2469_v21, %v483_v27  ;;  %v434_v35 = vsub.f32 %v2472_v22, %v433_v28  ;;  %v445_v39 = vsub.f32 %v2475_v23, %v444_v29  ;;  %p2071_p10 = pnand %p2070_p2, %p2663_p9  ;;  %s2075_s24 = scalar_lea.vmem %s2074_s27, 256 }
  0xa6   : > { %v466_v44 = vand.u32 4294901760, %v465_v42  ;;  %v456_v45 = vsub.f32 %v454_v30, %v455_v38  ;;  %v2536_v3 = vsub.f32 %v993_v58, %v2533_v60  ;;  %p2076_p0 = scmp.lt.s32.totalorder %s2594_s10, %s2074_s27  ;;  %p2077_p7 = scmp.lt.s32.totalorder %s2075_s24, %s2069_s15 }
  0xa7   : > { %v478_v36 = vsub.f32 %v476_v26, %v477_v32  ;;  %v435_v37 = vand.u32 4294901760, %v434_v35  ;;  %988 = vperm.xlu0 %1924, %v985_v31   ;;  %v485_v40 = vand.u32 4294901760, %v484_v33  ;;  %v446_v43 = vand.u32 4294901760, %v445_v39  ;;  %p2072_p1 = pneg %p2071_p10 }
  0xa8   : > { %v457_v46 = vand.u32 4294901760, %v456_v45  ;;  %v467_v47 = vsub.f32 %v465_v42, %v466_v44  ;;  %p2078_p5 = por %p2077_p7, %p2076_p0 }
  0xa9   : > { %v479_v41 = vand.u32 4294901760, %v478_v36  ;;  %436 = vmatmul.mubr.f32.vlgmr.msra.gmra.mrb[0].mxu1 %v435_v37 }
  0xaa   : > { %441 = vmatprep.mubr.f32.mxu1 %v2168_v0  ;;  %v468_v48 = vand.u32 4294901760, %v467_v47  ;;  %p2079_p8 = pnand %p2078_p5, %p2072_p1 }
  0xab   : > { %480 = vmatprep.subr.mxu0 %v479_v41  ;;  %1755 = vmatprep.subr.mxu1 %v479_v41 }
  0xac   : > { %486 = vmatpush1.msra.mxu0 %v485_v40  ;;  %1756 = vmatpush1.msra.mxu1 %v485_v40 }
  0xad   : > { %551 = vmatmul.mubr.f32.vlgmr.msra.gmra.mrb[0].mxu0 %v2458_v12  ;;  %580 = vmatprep.subr.mxu0 %v476_v26 }
  0xae   : > { %583 = vmatpush1.msra.mxu0 %v2469_v21  ;;  %646 = vmatprep.mubr.f32.mxu0 %v2168_v0 }
  0xaf   : > { %680 = vmatprep.subr.mxu0 %v2466_v20  ;;  %447 = vmatmul.mubr.f32.gmra.mrb[2].mxu1 %v446_v43 }
  0xb0   : > { %452 = vmatprep.mubr.f32.mxu1 %v2168_v0 }
  0xb3   : > { %458 = vmatmul.mubr.f32.gmra.mrb[4].mxu1 %v457_v46 }
  0xb4   : > { %463 = vmatprep.mubr.f32.mxu1 %v2168_v0 }
  0xb5   : > { %649 = vmatmul.mubr.f32.vlgmr.msra.gmra.mrb[0].mxu0 %v2472_v22 }
  0xb6   : > { %654 = vmatprep.mubr.f32.mxu0 %v2168_v0  ;;  %682 = vmatpush1.msra.mxu0 %v2456_v11 }
  0xb7   : > { %785 = vmatprep.subr.mxu0 %v477_v32  ;;  %469 = vmatmul.mubr.f32.gmra.mrb[6].mxu1 %v468_v48 }
  0xb8   : > { %556 = vmatprep.mubr.f32.mxu1 %v2168_v0 }
  0xb9   : > { %657 = vmatmul.mubr.f32.gmra.mrb[2].mxu0 %v2475_v23 }
  0xba   : > { %662 = vmatprep.mubr.f32.mxu0 %v2168_v0 }
  0xbb   : > { %558 = vmatmul.mubr.f32.vlgmr.msra.gmra.mrb[2].mxu1 %v2460_v13 }
  0xbc   : > { %563 = vmatprep.mubr.f32.mxu1 %v2168_v0 }
  0xbd   : > { %665 = vmatmul.mubr.f32.gmra.mrb[4].mxu0 %v454_v30 }
  0xbe   : > { %670 = vmatprep.mubr.f32.mxu0 %v2168_v0 }
  0xbf   : > { %565 = vmatmul.mubr.f32.gmra.mrb[4].mxu1 %v2464_v18 }
  0xc0   : > { %570 = vmatprep.mubr.f32.mxu1 %v2168_v0 }
  0xc1   : > { %673 = vmatmul.mubr.f32.gmra.mrb[6].mxu0 %v465_v42 }
  0xc2   : > { %745 = vmatprep.mubr.f32.mxu0 %v2168_v0 }
  0xc3   : > { %572 = vmatmul.mubr.f32.gmra.mrb[6].mxu1 %v2486_v34 }
  0xc4   : > { %1067 = vmatprep.mubr.f32.mxu1 %v2168_v0 }
  0xc5   : > { %749 = vmatmul.mubr.f32.vlgmr.msra.gmra.mrb[0].mxu0 %v433_v28 }
  0xc6   : > { %754 = vmatprep.mubr.f32.mxu0 %v2168_v0  ;;  %789 = vmatpush1.msra.mxu0 %v483_v27 }
  0xc7   : > { %882 = vmatprep.subr.mxu0 %v2466_v20 }
  0xc9   : > { %758 = vmatmul.mubr.f32.gmra.mrb[2].mxu0 %v444_v29 }
  0xca   : > { %763 = vmatprep.mubr.f32.mxu0 %v2168_v0 }
  0xcd   : > { %767 = vmatmul.mubr.f32.gmra.mrb[4].mxu0 %v455_v38 }
  0xce   : > { %772 = vmatprep.mubr.f32.mxu0 %v2168_v0 }
  0xd1   : > { %776 = vmatmul.mubr.f32.gmra.mrb[6].mxu0 %v466_v44 }
  0xd2   : > { %852 = vmatprep.mubr.f32.mxu0 %v2168_v0 }
  0xd5   : > { %854 = vmatmul.mubr.f32.vlgmr.msra.gmra.mrb[0].mxu0 %v2458_v12 }
  0xd6   : > { %859 = vmatprep.mubr.f32.mxu0 %v2168_v0  ;;  %884 = vmatpush1.msra.mxu0 %v2456_v11 }
  0xd9   : > { %861 = vmatmul.mubr.f32.gmra.mrb[2].mxu0 %v2460_v13 }
  0xda   : > { %866 = vmatprep.mubr.f32.mxu0 %v2168_v0 }
  0xdd   : > { %868 = vmatmul.mubr.f32.gmra.mrb[4].mxu0 %v2464_v18 }
  0xde   : > { %873 = vmatprep.mubr.f32.mxu0 %v2168_v0 }
  0xe1   : > { %875 = vmatmul.mubr.f32.gmra.mrb[6].mxu0 %v2486_v34 }
  0xe2   : > { %947 = vmatprep.mubr.f32.mxu0 %v2168_v0 }
  0xe5   : > { %949 = vmatmul.mubr.f32.vlgmr.msra.gmra.mrb[0].mxu0 %v2458_v12  ;;  %v1070_v12 = vand.u32 4294901760, %v2536_v3 }
  0xe6   : > { %954 = vmatprep.mubr.f32.mxu0 %v2168_v0 }
  0xe7   : > { %v2546_v26 = vsub.f32 %v2536_v3, %v1070_v12 }
  0xe9   : > { %956 = vmatmul.mubr.f32.gmra.mrb[2].mxu0 %v2460_v13 }
  0xea   : > { %961 = vmatprep.mubr.f32.mxu0 %v2168_v0 }
  0xed   : > { %963 = vmatmul.mubr.f32.gmra.mrb[4].mxu0 %v2464_v18 }
  0xee   : > { %968 = vmatprep.mubr.f32.mxu0 %v2168_v0 }
  0xf1   : > { %970 = vmatmul.mubr.f32.gmra.mrb[6].mxu0 %v2486_v34 }
 0x11e   : > { %v327_v59 = vpop.permute.xlu0 %326 }
 0x11f   : > { %v337_v62 = vpop.permute.xlu1 %336 }
 0x122   : > { %v332_v1 = vpop.permute.xlu0 %331 }
 0x123   : > { %v342_v16 = vpop.permute.xlu1 %341 }
 0x17c   : > { %v437_v49 = vpop.f32.mrb[0].mxu1 }
 0x17d   : > { %v439_v50 = vpop.f32.mrb[1].mxu1  ;;  %v438_v61 = vadd.f32 %v437_v49, %v327_v59 }
 0x17e   : > { %v440_v63 = vadd.f32 %v439_v50, %v327_v59 }
 0x18e   : > { %v559_v51 = vpop.f32.mrb[2].mxu1 }
 0x18f   : > { %v561_v52 = vpop.f32.mrb[3].mxu1  ;;  %v1761_v7 = vadd.f32 %v559_v51, %v332_v1 }
 0x190   : > { %v1763_v9 = vadd.f32 %v561_v52, %v332_v1 }
 0x192   : > { %v566_v53 = vpop.f32.mrb[4].mxu1 }
 0x193   : > { %v568_v54 = vpop.f32.mrb[5].mxu1  ;;  %v1765_v19 = vadd.f32 %v566_v53, %v337_v62 }
 0x194   : > { %v1767_v22 = vadd.f32 %v568_v54, %v337_v62 }
 0x196   : > { %v573_v55 = vpop.f32.mrb[6].mxu1 }
 0x197   : > { %v575_v56 = vpop.f32.mrb[7].mxu1  ;;  %v1769_v27 = vadd.f32 %v573_v55, %v342_v16 }
 0x198   : > { %v1771_v32 = vadd.f32 %v575_v56, %v342_v16 }
 0x1b8   : > { %v950_v2 = vpop.f32.mrb[0].mxu0 }
 0x1b9   : > { %v1758_v4 = vadd.f32 %v950_v2, %v438_v61  ;;  %v952_v5 = vpop.f32.mrb[1].mxu0 }
 0x1ba   : > { %v1760_v6 = vadd.f32 %v952_v5, %v440_v63 }
 0x1bb   : > { %v976_v8 = vmax.f32 %v1758_v4, 0.0 }
 0x1bc   : > { %v977_v10 = vmax.f32 %v1760_v6, 0.0  ;;  %v957_v11 = vpop.f32.mrb[2].mxu0 }
 0x1bd   : > { %v997_v13 = vand.u32 4294901760, %v976_v8  ;;  %v1762_v14 = vadd.f32 %v1761_v7, %v957_v11  ;;  %v959_v15 = vpop.f32.mrb[3].mxu0 }
 0x1be   : > { %v995_v17 = vand.u32 4294901760, %v977_v10  ;;  %v1764_v18 = vadd.f32 %v1763_v9, %v959_v15 }
 0x1bf   : > { %v2539_v20 = vsub.f32 %v976_v8, %v997_v13  ;;  %v978_v21 = vmax.f32 %v1762_v14, 0.0 }
 0x1c0   : > { %v2541_v23 = vsub.f32 %v977_v10, %v995_v17  ;;  %v979_v24 = vmax.f32 %v1764_v18, 0.0  ;;  %v964_v25 = vpop.f32.mrb[4].mxu0 }
 0x1c1   : > { %v1087_v28 = vand.u32 4294901760, %v2539_v20  ;;  %v1001_v29 = vand.u32 4294901760, %v978_v21  ;;  %v1766_v30 = vadd.f32 %v1765_v19, %v964_v25  ;;  %v966_v31 = vpop.f32.mrb[5].mxu0 }
 0x1c2   : > { %v1081_v33 = vand.u32 4294901760, %v2541_v23  ;;  %v999_v34 = vand.u32 4294901760, %v979_v24  ;;  %v1768_v35 = vadd.f32 %v1767_v22, %v966_v31 }
 0x1c3   : > { %v1088_v36 = vsub.f32 %v2539_v20, %v1087_v28  ;;  %v2551_v37 = vpack.c.bf16 %v1001_v29, %v997_v13  ;;  %v2553_v38 = vsub.f32 %v978_v21, %v1001_v29  ;;  %v980_v39 = vmax.f32 %v1766_v30, 0.0 }
 0x1c4   : > { %v2555_v40 = vsub.f32 %v979_v24, %v999_v34  ;;  %v981_v41 = vmax.f32 %v1768_v35, 0.0  ;;  %v971_v42 = vpop.f32.mrb[6].mxu0  ;;  %v2557_v43 = vpack.c.bf16 %v999_v34, %v995_v17  ;;  %v1082_v44 = vsub.f32 %v2541_v23, %v1081_v33 }
 0x1c5   : > { %v1089_v45 = vand.u32 4294901760, %v1088_v36  ;;  %v1099_v46 = vand.u32 4294901760, %v2553_v38  ;;  %v1005_v47 = vand.u32 4294901760, %v980_v39  ;;  %v1770_v48 = vadd.f32 %v1769_v27, %v971_v42  ;;  %v973_v49 = vpop.f32.mrb[7].mxu0 }
 0x1c6   : > { %v1093_v50 = vand.u32 4294901760, %v2555_v40  ;;  %v1003_v51 = vand.u32 4294901760, %v981_v41  ;;  %v1772_v52 = vadd.f32 %v1771_v32, %v973_v49  ;;  %1708 = vmatprep.subr.bf16.mxu1 %v2557_v43  ;;  %v1083_v53 = vand.u32 4294901760, %v1082_v44 }
 0x1c7   : > { %v1100_v54 = vsub.f32 %v2553_v38, %v1099_v46  ;;  %v1110_v55 = vsub.f32 %v980_v39, %v1005_v47  ;;  %v982_v56 = vmax.f32 %v1770_v48, 0.0  ;;  %1710 = vmatpush1.bf16.msra.mxu1 %v2551_v37  ;;  %v1723_v57 = vpack.c.bf16 %v2555_v40, %v2541_v23 }
 0x1c8   : > { %v1104_v58 = vsub.f32 %v981_v41, %v1003_v51  ;;  %v983_v59 = vmax.f32 %v1772_v52, 0.0  ;;  %v1094_v61 = vsub.f32 %v2555_v40, %v1093_v50  ;;  %v1725_v62 = vpack.c.bf16 %v2553_v38, %v2539_v20 }
 0x1c9   : > { %v1101_v63 = vand.u32 4294901760, %v1100_v54  ;;  %v1111_v1 = vand.u32 4294901760, %v1110_v55  ;;  %v1009_v2 = vand.u32 4294901760, %v982_v56  ;;  %v1739_v4 = vpack.c.bf16 %v1093_v50, %v1081_v33 }
 0x1ca   : > { %v1105_v5 = vand.u32 4294901760, %v1104_v58  ;;  %v1007_v6 = vand.u32 4294901760, %v983_v59  ;;  %v1095_v7 = vand.u32 4294901760, %v1094_v61  ;;  %v1741_v8 = vpack.c.bf16 %v1099_v46, %v1087_v28 }
 0x1cb   : > { %v1713_v9 = vpack.c.bf16 %v1009_v2, %v1005_v47  ;;  %v1122_v10 = vsub.f32 %v982_v56, %v1009_v2  ;;  %v1717_v11 = vpack.c.bf16 %v1101_v63, %v1089_v45  ;;  %v1112_v16 = vsub.f32 %v1110_v55, %v1111_v1 }
 0x1cc   : > { %v1116_v13 = vsub.f32 %v983_v59, %v1007_v6  ;;  %v1711_v14 = vpack.c.bf16 %v1007_v6, %v1003_v51  ;;  %v1715_v15 = vpack.c.bf16 %v1095_v7, %v1083_v53  ;;  %v1072_v20 = vand.u32 4294901760, %v2546_v26 }
 0x1cd   : > { %v1123_v17 = vand.u32 4294901760, %v1122_v10  ;;  %v1729_v18 = vpack.c.bf16 %v1122_v10, %v1110_v55  ;;  %v1106_v21 = vsub.f32 %v1104_v58, %v1105_v5  ;;  %v1113_v28 = vand.u32 4294901760, %v1112_v16 }
 0x1ce   : > { %v1117_v19 = vand.u32 4294901760, %v1116_v13  ;;  %1712 = vmatprep.subr.bf16.mxu1 %v1711_v14  ;;  %v1727_v22 = vpack.c.bf16 %v1116_v13, %v1104_v58 }
 0x1cf   : > { %v1124_v23 = vsub.f32 %v1122_v10, %v1123_v17  ;;  %1714 = vmatpush1.bf16.msra.mxu1 %v1713_v9  ;;  %v1745_v24 = vpack.c.bf16 %v1123_v17, %v1111_v1  ;;  %v1107_v30 = vand.u32 4294901760, %v1106_v21 }
 0x1d0   : > { %1716 = vmatprep.subr.bf16.mxu1 %v1715_v15  ;;  %v1118_v25 = vsub.f32 %v1116_v13, %v1117_v19  ;;  %v1743_v27 = vpack.c.bf16 %v1117_v19, %v1105_v5 }
 0x1d1   : > { %v1125_v29 = vand.u32 4294901760, %v1124_v23 }
 0x1d2   : > { %1073 = vmatmul.mubr.f32.vlgmr.msra.gmra.mrb[8].mxu1 %v1072_v20  ;;  %v1119_v31 = vand.u32 4294901760, %v1118_v25 }
 0x1d3   : > { %1718 = vmatpush1.bf16.msra.mxu1 %v1717_v11  ;;  %v1721_v32 = vpack.c.bf16 %v1125_v29, %v1113_v28  ;;  %1183 = vmatprep.mubr.f32.mxu1 %v2168_v0 }
 0x1d4   : > { %v1719_v33 = vpack.c.bf16 %v1119_v31, %v1107_v30 }
 0x1d6   : > { %1720 = vmatprep.subr.bf16.mxu1 %v1719_v33 }
 0x1d7   : > { %1722 = vmatpush1.bf16.msra.mxu1 %v1721_v32 }
 0x1d8   : > { %1724 = vmatprep.subr.bf16.mxu1 %v1723_v57 }
 0x1da   : > { %1185 = vmatmul.mubr.f32.vlgmr.msra.gmra.mrb[8].mxu1 %v2533_v60 }
 0x1db   : > { %1726 = vmatpush1.bf16.msra.mxu1 %v1725_v62  ;;  %1271 = vmatprep.mubr.f32.mxu1 %v2168_v0 }
 0x1dc   : > { %1728 = vmatprep.subr.bf16.mxu1 %v1727_v22 }
 0x1df   : > { %1730 = vmatpush1.bf16.msra.mxu1 %v1729_v18 }
 0x1e0   : > { %1732 = vmatprep.subr.bf16.mxu1 %v2557_v43 }
 0x1e2   : > { %1274 = vmatmul.mubr.f32.vlgmr.msra.gmra.mrb[8].mxu1 %v2536_v3  ;;  %v989_v3 = vpop.permute.xlu0 %988 }
 0x1e3   : > { %1734 = vmatpush1.bf16.msra.mxu1 %v2551_v37  ;;  %1352 = vmatprep.mubr.f32.mxu1 %v2168_v0 }
 0x1e4   : > { %1736 = vmatprep.subr.bf16.mxu1 %v1711_v14 }
 0x1e7   : > { %1738 = vmatpush1.bf16.msra.mxu1 %v1713_v9 }
 0x1e8   : > { %1740 = vmatprep.subr.bf16.mxu1 %v1739_v4 }
 0x1ea   : > { %1356 = vmatmul.mubr.f32.vlgmr.msra.gmra.mrb[8].mxu1 %v1070_v12 }
 0x1eb   : > { %1742 = vmatpush1.bf16.msra.mxu1 %v1741_v8  ;;  %1450 = vmatprep.mubr.f32.mxu1 %v2168_v0 }
 0x1ec   : > { %1744 = vmatprep.subr.bf16.mxu1 %v1743_v27 }
 0x1ef   : > { %1746 = vmatpush1.bf16.msra.mxu1 %v1745_v24 }
 0x1f0   : > { %1748 = vmatprep.subr.bf16.mxu1 %v2557_v43 }
 0x1f2   : > { %1452 = vmatmul.mubr.f32.vlgmr.msra.gmra.mrb[8].mxu1 %v2533_v60 }
 0x1f3   : > { %1750 = vmatpush1.bf16.msra.mxu1 %v2551_v37  ;;  %1530 = vmatprep.mubr.f32.mxu1 %v2168_v0 }
 0x1f4   : > { %1752 = vmatprep.subr.bf16.mxu1 %v1711_v14 }
 0x1f7   : > { %1754 = vmatpush1.bf16.msra.mxu1 %v1713_v9 }
 0x1fa   : > { %1532 = vmatmul.mubr.f32.vlgmr.msra.gmra.mrb[8].mxu1 %v2533_v60 }
 0x2cd   : > { %v1533_v12 = vpop.f32.mrb[8].mxu1 }
 0x2ce   : > { %v1773_v26 = vadd.f32 %v1533_v12, %v989_v3  ;;  %v1535_v34 = vpop.f32.mrb[9].mxu1 }
 0x2cf   : > { %v1774_v35 = vadd.f32 %v1535_v34, %v989_v3 }
 0x2d1   : > { %v1540_v36 = vcombine.low %v1773_v26, %v1774_v35 }
 0x2d3   : > { %1542 = vst [vmem:[%s312_s26] sm:$0xff] %v1540_v36 }
 0x2d4   : > { %2082 = shalt.err (!%p2079_p8)
}
 0x2d5   : > { %s2083_s16 = scalar_lea.hbm %s2592_s14, 128  ;;  %s2087_s17 = scalar_lea.hbm %s2646_s5, 256 }
 0x2d6   : > { %p2084_p3 = scmp.ne.s32.totalorder %s2592_s14, %s2083_s16  ;;  %p2088_p13 = scmp.lt.u32.totalorder %s2592_s14, %s2646_s5 }
 0x2d7   : > { %p2089_p12 = scmp.lt.u32.totalorder %s2087_s17, %s2083_s16  ;;  %p2091_p2 = scmp.lt.u32.totalorder %s2083_s16, %s2592_s14 }
 0x2d8   : > { %p2085_p11 = pnand %p2084_p3, %p2663_p9 }
 0x2d9   : > { %p2090_p4 = por %p2089_p12, %p2088_p13 }
 0x2da   : > { %p2086_p6 = pneg %p2085_p11 }
 0x2db   : > { %p2092_p10 = por %p2091_p2, %p2090_p4 }
 0x2dd   : > { %p2093_p1 = pnand %p2092_p10, %p2086_p6 }
 0x2df   : > { %2096 = shalt.err (!%p2093_p1)
}
 0x2e0   : > { %1835 = dma.vmem_to_hbm [thread:$0]  (%p2663_p9), %s2594_s10, 128, %s2592_s14, %s1544_s29  }
 0x2e1 PF: > { %s1572_s26 = sand.u32 1, %s2139_s18   ;;  %p2664_p0 = scmp.ne.s32.totalorder %s2659_s13, 0 }
 0x2e2   : > { %p2665_p7 = scmp.ge.s32.totalorder %s2159_s23, 2  ;;  %s1573_s8 = scalar_lea.sflag [#allocation4], %s1572_s26 }
 0x2e4   : > { %p1855_p5 = pnand %p2665_p7, %p2664_p0 }
 0x2e6   : > { %2134 = dma.done.wait (!%p1855_p5), %s1573_s8, 128  }
 0x2e7   : > { %2136 = vsyncadd (!%p1855_p5), %s1573_s8, 4294967168  ;;  %s23_s23 = sadd.s32 1, %s2159_s23   ;;  %s2666_s18 = smov %s2143_s19 }
 0x2e8   : > { %p20_p8 = scmp.ge.s32.totalorder %s23_s23, 4   ;;  %s2667_s19 = smov %s2147_s20 }
 0x2e9   : > { %s2668_s20 = smov %s2383_s12  ;;  %s2669_s21 = smov %s2155_s22 }
 0x2ea   : > { %s2670_s22 = smov %s2672_s6  ;;  %22 = sbr.rel (!%p20_p8) target bundleno = 8 (0x8), region = 101 }
 0x2f1   :  { %1578 = vsyncpa [#allocation3], 1 }
 0x2f2   :  { %1580 = vsyncpa [#allocation3 + $0x1], 1 }
 0x2f3   :  { %1581 = vsyncpa [#allocation6], 1 }
 0x2f4   :  { %1582 = vsyncpa [#allocation9], 1 }
 0x2f5   :  { %1583 = vsyncpa [#allocation4], 1 }
 0x2f6   :  { %1585 = vsyncpa [#allocation4 + $0x1], 1 }

</bundles_post_ra>
